<compile_context>
chip_gen: v6e
topology: v6e:2x2x1
jax: 0.10.0
libtpu: 0.0.40
codegen_flags: <defaults>
</compile_context>

<pallas_src>
import jax
import jax.numpy as jnp
from jax.experimental import pallas as pl
from jax.experimental.pallas import tpu as pltpu


def _round_up(x, m):
    return ((x + m - 1) // m) * m


def patch_embed_kernel(p_ref, w_ref, b_ref, pos_ref, o_ref):
    # p_ref  : (m_tile, k_pad)    patch rows of one image tile (compute dtype)
    # w_ref  : (emb_pad, k_pad)   conv weight, rows over emb (compute dtype)
    # b_ref  : (1, emb_pad)       conv bias, f32
    # pos_ref: (m_tile, emb_pad)  positions[1:] rows for this tile, f32
    # o_ref  : (m_tile, emb_pad)  output rows (patch part only)
    proj = jax.lax.dot_general(
        p_ref[...], w_ref[...],
        dimension_numbers=(((1,), (1,)), ((), ())),   # contract patch_dim, rhs transposed
        preferred_element_type=jnp.float32,
    )
    o_ref[...] = (proj + b_ref[...] + pos_ref[...]).astype(o_ref.dtype)


def patch_embedding(x, conv_w, conv_b, cls_token, positions, patch_size,
                    compute_dtype=jnp.bfloat16, out_dtype=jnp.float32,
                    max_m_tile=512):
    """x: (B, C, H, W) float32 (NCHW, like PyTorch).
    conv_w: (emb, C, ph, pw), conv_b: (emb,), cls_token: (1, 1, emb),
    positions: (n_patches+1, emb).  Returns (B, n_patches+1, emb)."""
    B, C, H, W = x.shape
    ph, pw = patch_size
    gh, gw = H // ph, W // pw
    n_patches = gh * gw
    emb = conv_w.shape[0]
    patch_dim = C * ph * pw

    # Aligned / padded sizes (lane = 128, sublane = 8).
    k_pad = _round_up(patch_dim, 128)
    emb_pad = _round_up(emb, 128)
    np_pad = _round_up(n_patches, 8)
    if np_pad <= max_m_tile:
        m_tile = np_pad
    else:
        m_tile = max_m_tile
        np_pad = _round_up(n_patches, m_tile)
    n_m_tiles = np_pad // m_tile

    # --- glue: extract non-overlapping patches (row-major over (gh, gw)) ---
    # TODO(synk): fuse this patch gather into the kernel (grid over (B, gh),
    # rearrange (C,ph,pw)->patch_dim in VMEM) to avoid the extra HBM copy; the
    # bf16 cast is folded into the same XLA copy to at least halve its bytes.
    patches = x.reshape(B, C, gh, ph, gw, pw).transpose(0, 2, 4, 1, 3, 5)
    patches = patches.reshape(B, n_patches, patch_dim).astype(compute_dtype)
    if (np_pad, k_pad) != (n_patches, patch_dim):
        patches = jnp.pad(
            patches, ((0, 0), (0, np_pad - n_patches), (0, k_pad - patch_dim)))

    # Weight kept as (emb, patch_dim): no HBM transpose, dot_general folds it.
    w = conv_w.reshape(emb, patch_dim).astype(compute_dtype)
    if (emb_pad, k_pad) != (emb, patch_dim):
        w = jnp.pad(w, ((0, emb_pad - emb), (0, k_pad - patch_dim)))

    bias = conv_b.reshape(1, emb).astype(jnp.float32)
    if emb_pad != emb:
        bias = jnp.pad(bias, ((0, 0), (0, emb_pad - emb)))

    pos_rest = positions[1:].astype(jnp.float32)
    if (np_pad, emb_pad) != (n_patches, emb):
        pos_rest = jnp.pad(
            pos_rest, ((0, np_pad - n_patches), (0, emb_pad - emb)))

    out_pad = pl.pallas_call(
        patch_embed_kernel,
        out_shape=jax.ShapeDtypeStruct((B, np_pad, emb_pad), out_dtype),
        grid_spec=pltpu.PrefetchScalarGridSpec(
            num_scalar_prefetch=0,
            grid=(B, n_m_tiles),
            in_specs=[
                pl.BlockSpec((pl.Squeezed(), m_tile, k_pad),
                             lambda bi, mi: (bi, mi, 0)),
                pl.BlockSpec((emb_pad, k_pad), lambda bi, mi: (0, 0)),
                pl.BlockSpec((1, emb_pad), lambda bi, mi: (0, 0)),
                pl.BlockSpec((m_tile, emb_pad), lambda bi, mi: (mi, 0)),
            ],
            out_specs=pl.BlockSpec((pl.Squeezed(), m_tile, emb_pad),
                                   lambda bi, mi: (bi, mi, 0)),
        ),
        compiler_params=pltpu.CompilerParams(
            dimension_semantics=("parallel", "parallel")),
    )(patches, w, bias, pos_rest)

    # Strip alignment padding, then prepend the (batch-invariant) cls row.
    out_patches = out_pad[:, :n_patches, :emb]
    cls_row = (cls_token.reshape(1, 1, emb).astype(jnp.float32)
               + positions[0].reshape(1, 1, emb).astype(jnp.float32)
               ).astype(out_dtype)
    cls_rows = jnp.broadcast_to(cls_row, (B, 1, emb))
    return jnp.concatenate([cls_rows, out_patches], axis=1)


def _reference(x, conv_w, conv_b, cls_token, positions, patch_size):
    # Pure-JAX f32 reference replicating the PyTorch forward.
    out = jax.lax.conv_general_dilated(
        x, conv_w, window_strides=patch_size, padding="VALID",
        dimension_numbers=("NCHW", "OIHW", "NCHW"))
    out = out + conv_b[None, :, None, None]
    B, E, h, w = out.shape
    out = out.transpose(0, 2, 3, 1).reshape(B, h * w, E)  # b (h w) e
    cls = jnp.broadcast_to(cls_token, (B, 1, E))
    out = jnp.concatenate([cls, out], axis=1)
    return out + positions[None]


if __name__ == "__main__":
    # Small shapes consistent with the module.
    B, C, H, W = 2, 4, 16, 16
    patch_size = (8, 8)
    emb = 32
    n_patches = (H // patch_size[0]) * (W // patch_size[1])  # 4

    key = jax.random.PRNGKey(0)
    k_x, k_w, k_b, k_cls, k_pos = jax.random.split(key, 5)
    x = jax.random.normal(k_x, (B, C, H, W), dtype=jnp.float32)
    conv_w = jax.random.normal(k_w, (emb, C, patch_size[0], patch_size[1]),
                               dtype=jnp.float32) * 0.02
    conv_b = jax.random.normal(k_b, (emb,), dtype=jnp.float32) * 0.02
    cls_token = jax.random.normal(k_cls, (1, 1, emb), dtype=jnp.float32)
    positions = jax.random.normal(k_pos, (n_patches + 1, emb), dtype=jnp.float32)

    out = patch_embedding(x, conv_w, conv_b, cls_token, positions, patch_size)
    out = jax.block_until_ready(out)

    ref = _reference(x, conv_w, conv_b, cls_token, positions, patch_size)
    assert out.shape == (B, n_patches + 1, emb)
    # bf16 MXU operands (f32 accumulation) -> loosen tolerance vs f32 reference.
    assert jnp.allclose(out, ref, atol=5e-2, rtol=5e-2)

    print("KERNEL_OK")
</pallas_src>

<mosaic_0001>
module attributes {stable_mosaic.version = 11 : i64} {
  func.func @patch_embed_kernel(%arg0: i32, %arg1: i32, %arg2: memref<1x8x256xbf16, #tpu.memory_space<vmem>>, %arg3: memref<128x256xbf16, #tpu.memory_space<vmem>>, %arg4: memref<1x128xf32, #tpu.memory_space<vmem>>, %arg5: memref<8x128xf32, #tpu.memory_space<vmem>>, %arg6: memref<1x8x128xf32, #tpu.memory_space<vmem>>) attributes {dimension_semantics = [#tpu.dimension_semantics<parallel>, #tpu.dimension_semantics<parallel>], iteration_bounds = array<i64: 2, 1>, scalar_prefetch = 0 : i64, scratch_operands = 0 : i64, tpu.core_type = #tpu.core_type<tc>, window_params = [{transform_indices = @transform_0, window_bounds = array<i64: 1, 8, 256>}, {pipeline_mode = #tpu.pipeline_mode<synchronous>, transform_indices = @transform_1, window_bounds = array<i64: 128, 256>}, {pipeline_mode = #tpu.pipeline_mode<synchronous>, transform_indices = @transform_2, window_bounds = array<i64: 1, 128>}, {transform_indices = @transform_3, window_bounds = array<i64: 8, 128>}, {transform_indices = @transform_4, window_bounds = array<i64: 1, 8, 128>}]} {
    %c0 = arith.constant 0 : index
    %c0_0 = arith.constant 0 : index
    %c0_1 = arith.constant 0 : index
    %0 = vector.load %arg2[%c0, %c0_0, %c0_1] : memref<1x8x256xbf16, #tpu.memory_space<vmem>>, vector<1x8x256xbf16>
    %1 = vector.shape_cast %0 : vector<1x8x256xbf16> to vector<8x256xbf16>
    %c0_2 = arith.constant 0 : index
    %c0_3 = arith.constant 0 : index
    %2 = vector.load %arg3[%c0_2, %c0_3] : memref<128x256xbf16, #tpu.memory_space<vmem>>, vector<128x256xbf16>
    %cst = arith.constant dense<0.000000e+00> : vector<8x128xf32>
    %3 = tpu.matmul %1, %2, %cst {dimension_numbers = #tpu.dot_dimension_numbers<[1], [1], [0], [0], [0, 0, 1, 0], [], []>} : vector<8x256xbf16>, vector<128x256xbf16>, vector<8x128xf32> -> vector<8x128xf32>
    %c0_4 = arith.constant 0 : index
    %c0_5 = arith.constant 0 : index
    %4 = vector.load %arg4[%c0_4, %c0_5] : memref<1x128xf32, #tpu.memory_space<vmem>>, vector<1x128xf32>
    %5 = vector.broadcast %4 : vector<1x128xf32> to vector<8x128xf32>
    %6 = arith.addf %3, %5 : vector<8x128xf32>
    %c0_6 = arith.constant 0 : index
    %c0_7 = arith.constant 0 : index
    %7 = vector.load %arg5[%c0_6, %c0_7] : memref<8x128xf32, #tpu.memory_space<vmem>>, vector<8x128xf32>
    %8 = arith.addf %6, %7 : vector<8x128xf32>
    %c0_8 = arith.constant 0 : index
    %c0_9 = arith.constant 0 : index
    %c0_10 = arith.constant 0 : index
    %9 = vector.load %arg6[%c0_8, %c0_9, %c0_10] : memref<1x8x128xf32, #tpu.memory_space<vmem>>, vector<1x8x128xf32>
    %10 = vector.shape_cast %9 : vector<1x8x128xf32> to vector<8x128xf32>
    %11 = vector.shape_cast %8 : vector<8x128xf32> to vector<1x8x128xf32>
    tpu.vector_store %arg6[%c0_8, %c0_9, %c0_10], %11 {strides = array<i32>} : memref<1x8x128xf32, #tpu.memory_space<vmem>>, vector<1x8x128xf32>,
    return
  }
  func.func @transform_0(%arg0: i32, %arg1: i32) -> (i32, i32, i32) {
    %c0_i32 = arith.constant 0 : i32
    %c0_i32_0 = arith.constant 0 : i32
    return %arg0, %arg1, %c0_i32 : i32, i32, i32
  }
  func.func @transform_1(%arg0: i32, %arg1: i32) -> (i32, i32) {
    %c0_i32 = arith.constant 0 : i32
    %c0_i32_0 = arith.constant 0 : i32
    %c0_i32_1 = arith.constant 0 : i32
    return %c0_i32, %c0_i32_0 : i32, i32
  }
  func.func @transform_2(%arg0: i32, %arg1: i32) -> (i32, i32) {
    %c0_i32 = arith.constant 0 : i32
    %c0_i32_0 = arith.constant 0 : i32
    %c0_i32_1 = arith.constant 0 : i32
    return %c0_i32, %c0_i32_0 : i32, i32
  }
  func.func @transform_3(%arg0: i32, %arg1: i32) -> (i32, i32) {
    %c0_i32 = arith.constant 0 : i32
    %c0_i32_0 = arith.constant 0 : i32
    return %arg1, %c0_i32 : i32, i32
  }
  func.func @transform_4(%arg0: i32, %arg1: i32) -> (i32, i32, i32) {
    %c0_i32 = arith.constant 0 : i32
    %c0_i32_0 = arith.constant 0 : i32
    return %arg0, %arg1, %c0_i32 : i32, i32, i32
  }
}

</mosaic_0001>

<bundles_post_ra>
// kernel: tpu_custom_call.1
= control target key start
LH: loop header
LB: loop body
LE: loop exit
PB: predicated region body
PF: predicated region fallthrough
CT: control target
= control target key end

     0   :  { %9 = vsyncpa [#allocation3], 0  ;;  %s1078_s0 = inlined_call_operand.hbm [shape: bf16[2,8,256], index: 0, kind: input, shape index: {}]   ;;  %s1079_s1 = inlined_call_operand.hbm [shape: bf16[128,256], index: 1, kind: input, shape index: {}]   ;;  %s1080_s2 = inlined_call_operand.vmem [shape: f32[1,128], index: 2, kind: input, shape index: {}]   ;;  %s1081_s3 = inlined_call_operand.hbm [shape: f32[8,128], index: 3, kind: input, shape index: {}]   ;;  %s1082_s4 = inlined_call_operand.hbm [shape: f32[2,8,128], index: 4, kind: output, shape index: {}]  }
   0x1   :  { %11 = vsyncpa [#allocation3 + $0x1], 0 }
   0x2   :  { %12 = vsyncpa [#allocation6], 0 }
   0x3   :  { %13 = vsyncpa [#allocation4], 0 }
   0x4   :  { %15 = vsyncpa [#allocation4 + $0x1], 0  ;;  %s885_s15 = smov 0   ;;  %s887_s16 = smov 0  }
   0x5   :  { %s889_s17 = smov 0   ;;  %s891_s18 = smov 0  }
   0x6   :  { %s893_s19 = smov 0   ;;  %s895_s20 = smov 0  }
   0x7 LB: > { %s539_s21 = sadd.s32 4294967295, %s852_s20   ;;  %s540_s22 = sadd.s32 4294967294, %s852_s20   ;;  %s852_s20 = sphi %s895_s20, %s21_s20   ;;  %s848_s19 = sphi %s893_s19, %s1102_s19   ;;  %s844_s18 = sphi %s891_s18, %s1101_s18   ;;  %s840_s17 = sphi %s889_s17, %s1100_s17   ;;  %s836_s16 = sphi %s887_s16, %s1099_s16   ;;  %s832_s15 = sphi %s885_s15, %s1098_s15  }
   0x8   : > { %p55_p0 = scmp.ne.s32.totalorder %s836_s16, %s832_s15  ;;  %p919_p1 = scmp.eq.s32.totalorder %s539_s21, 0 }
   0x9   : > { %p923_p2 = scmp.eq.s32.totalorder %s539_s21, 1  ;;  %p155_p3 = scmp.eq.s32.totalorder %s540_s22, 1 }
   0xa   : > { %s1086_s23 = scalar_select %p919_p1, 1, 0 }
   0xb   : > { %p929_p4 = por %p919_p1, %p55_p0  ;;  %p541_p5 = scmp.ge.s32.totalorder %s852_s20, 1 }
   0xc   : > { %p934_p6 = por %p155_p3, %p55_p0  ;;  %p162_p7 = scmp.lt.s32.totalorder %s852_s20, 3 }
   0xd   : > { %s1088_s25 = scalar_select %p929_p4, 1, 0 }
   0xe   : > { %s1089_s26 = scalar_select %p934_p6, 1, 0 }
   0xf   : > { %p939_p8 = pnand %p541_p5, %p162_p7  ;;  %s854_s28 = smov [#allocation5]  }
  0x10   : > { %s174_s29 = sshll.u32 %s854_s28, 4  ;;  %s855_s5 = smov [#allocation7]   ;;  %s175_s29 = int_to_ptr.vmem [resolvable:$true] %s174_s29 }
  0x11   : > { %p589_p9 = pneg %p939_p8  ;;  %s193_s6 = sshll.u32 %s855_s5, 4  ;;  %s194_s6 = int_to_ptr.vmem [resolvable:$true] %s193_s6 }
  0x12   : > { %s699_s7 = scalar_lea.vmem %s175_s29, 2048  ;;  %p707_p5 = scmp.lt.s32.totalorder %s175_s29, %s175_s29 }
  0x13   : > { %p948_p11 = pnand %p589_p9, %p919_p1  ;;  %p700_p13 = scmp.ne.s32.totalorder %s175_s29, %s699_s7 }
  0x14   : > { %p708_p7 = scmp.lt.s32.totalorder %s699_s7, %s699_s7 }
  0x15   : > { %p690_p12 = pneg %p948_p11 }
  0x16   : > { %p709_p10 = por %p708_p7, %p707_p5 }
  0x17   : > { %p702_p0 = pnand %p700_p13, %p690_p12 }
  0x19   : > { %p703_p3 = pneg %p702_p0 }
  0x1b   : > { %p710_p9 = pnand %p709_p10, %p703_p3 }
  0x1d   : > { %713 = shalt.err (!%p710_p9)
}
  0x1e   : > { %s856_s8 = smov 128   ;;  %s857_s9 = smov 8  }
  0x1f   : > { %592 = dma.hbm_to_vmem [thread:$0]  (!%p948_p11), %s1079_s1, 2048, %s175_s29, [#allocation6], %s856_s8, %s856_s8, %s857_s9  }
  0x20   : > { %s725_s12 = scalar_lea.vmem %s194_s6, 128  ;;  %p733_p1 = scmp.lt.s32.totalorder %s194_s6, %s194_s6 }
  0x21   : > { %p726_p6 = scmp.ne.s32.totalorder %s194_s6, %s725_s12  ;;  %p734_p4 = scmp.lt.s32.totalorder %s725_s12, %s725_s12 }
  0x23   : > { %p728_p13 = pnand %p726_p6, %p690_p12  ;;  %p735_p5 = por %p734_p4, %p733_p1 }
  0x25   : > { %p729_p0 = pneg %p728_p13 }
  0x27   : > { %p736_p10 = pnand %p735_p5, %p729_p0 }
  0x29   : > { %739 = shalt.err (!%p736_p10)
}
  0x2a   : > { %595 = dma.hbm_to_vmem [thread:$0]  (!%p948_p11), %s1081_s3, 128, %s194_s6, [#allocation6]  }
  0x2b   : > { %s33_s21 = sadd.s32 1, %s848_s19  ;;  %s42_s22 = sadd.s32 1, %s840_s17 }
  0x2c   : > { %p35_p1 = scmp.ge.s32.totalorder %s33_s21, 2  ;;  %p49_p4 = scmp.ne.s32.totalorder %s840_s17, %s836_s16 }
  0x2d   : > { %p50_p6 = scmp.eq.s32.totalorder %s852_s20, 0  ;;  %p606_p12 = scmp.lt.s32.totalorder %s852_s20, 2 }
  0x2e   : > { %s1104_s21 = smov (%p35_p1, %s33_s21), 0  ;;  %p980_p7 = por %p923_p2, %p49_p4 }
  0x2f   : > { %p51_p3 = por %p50_p6, %p49_p4  ;;  %s37_s29 = ssub.s32 %s848_s19, %s1104_s21 }
  0x30   : > { %s204_s30 = sand.u32 1, %s840_s17   ;;  %p40_p9 = scmp.eq.s32.totalorder %s37_s29, 0 }
  0x31   : > { %s545_s5 = sshll.u32 %s204_s30, 3  ;;  %s576_s6 = sshll.u32 %s848_s19, 7 }
  0x32   : > { %s989_s7 = scalar_select %p40_p9, %s840_s17, %s42_s22  }
  0x33   : > { %s216_s10 = scalar_lea.hbm %s1078_s0, %s576_s6  ;;  %s208_s11 = scalar_lea.vmem [#allocation2], %s545_s5 }
  0x34   : > { %s218_s12 = sshll.u32 %s208_s11, 4  ;;  %p996_p11 = pnand %p606_p12, %p51_p3  ;;  %s219_s12 = int_to_ptr.vmem [resolvable:$true] %s218_s12 }
  0x35   : > { %s205_s13 = scalar_lea.sflag [#allocation3], %s204_s30  ;;  %s753_s14 = scalar_lea.vmem %s219_s12, 128 }
  0x36   : > { %p742_p2 = pneg %p996_p11  ;;  %p754_p13 = scmp.ne.s32.totalorder %s219_s12, %s753_s14 }
  0x37   : > { %s858_s22 = smov [#allocation2]  }
  0x38   : > { %p756_p0 = pnand %p754_p13, %p742_p2  ;;  %s758_s29 = sshll.u32 %s858_s22, 4  ;;  %s759_s29 = int_to_ptr.vmem [resolvable:$false] %s758_s29 }
  0x39   : > { %s760_s6 = scalar_lea.vmem %s759_s29, 256  ;;  %p761_p10 = scmp.lt.s32.totalorder %s219_s12, %s759_s29 }
  0x3a   : > { %p757_p5 = pneg %p756_p0  ;;  %p762_p1 = scmp.lt.s32.totalorder %s760_s6, %s753_s14 }
  0x3c   : > { %p763_p4 = por %p762_p1, %p761_p10 }
  0x3e   : > { %p764_p6 = pnand %p763_p4, %p757_p5 }
  0x40   : > { %767 = shalt.err (!%p764_p6)
}
  0x41   : > { %599 = dma.hbm_to_vmem [thread:$0]  (!%p996_p11), %s216_s10, 128, %s219_s12, %s205_s13  }
  0x42   : > { %227 = sbr.rel (%p939_p8) target bundleno = 351 (0x15f), region = 36  ;;  %s1007_s30 = sand.u32 (!%p939_p8), 1, %s836_s16  }
  0x43   : > { %s549_s5 = sshll.u32 (!%p939_p8), %s1007_s30, 3  ;;  %s230_s8 = scalar_lea.sflag (!%p939_p8), [#allocation3], %s1007_s30 }
  0x44   : > { %s233_s9 = scalar_lea.vmem (!%p939_p8), [#allocation2], %s549_s5  ;;  %p1094_p12 = scmp.ne.s32.totalorder (!%p939_p8), %s1088_s25, 0 }
  0x47   : > { %819 = dma.done.wait (%p1094_p12), %s230_s8, 128  }
  0x48   : > { %821 = vsyncadd (%p1094_p12), %s230_s8, 4294967168  ;;  %p1095_p3 = scmp.ne.s32.totalorder %s1086_s23, 0 }
  0x4a   : > { %823 = dma.done.wait (%p1095_p3), [#allocation6], 2176  }
  0x4b   : > { %825 = vsyncadd (%p1095_p3), [#allocation6], 4294965120  ;;  %v662_v0 = vld [vmem:[#allocation5 + $0x74] ss:$8 sps:$4 sm:$0xff]   ;;  %v664_v1 = vld [vmem:[#allocation5 + $0x70] ss:$8 sps:$4 sm:$0xff]  }
  0x4c   : > { %378 = vmatprep.subr.bf16.mxu0 %v662_v0  ;;  %v665_v2 = vld [vmem:[#allocation5 + $0x64] ss:$8 sps:$4 sm:$0xff]   ;;  %v667_v3 = vld [vmem:[#allocation5 + $0x60] ss:$8 sps:$4 sm:$0xff]   ;;  %v668_v4 = vld [vmem:[#allocation5 + $0x54] ss:$8 sps:$4 sm:$0xff]  }
  0x4d   : > { %379 = vmatpush1.bf16.xpose.msra.mxu0 %v664_v1  ;;  %v267_v5 = vld [vmem:[%s233_s9] sm:$0xff]  ;;  %v671_v8 = vld [vmem:[#allocation5 + $0x44] ss:$8 sps:$4 sm:$0xff]   ;;  %v673_v9 = vld [vmem:[#allocation5 + $0x40] ss:$8 sps:$4 sm:$0xff]   ;;  %s573_s27 = sshll.u32 %s844_s18, 7 }
  0x4e   : > { %380 = vmatprep.subr.bf16.mxu0 %v665_v2  ;;  %v555_v6 = vcombine.high %v267_v5, %v267_v5  ;;  %v670_v7 = vld [vmem:[#allocation5 + $0x50] ss:$8 sps:$4 sm:$0xff]   ;;  %v674_v10 = vld [vmem:[#allocation5 + $0x34] ss:$8 sps:$4 sm:$0xff]   ;;  %v677_v12 = vld [vmem:[#allocation5 + $0x24] ss:$8 sps:$4 sm:$0xff]   ;;  %v554_v18 = vcombine.low %v267_v5, %v267_v5  ;;  %s1030_s13 = scalar_lea.hbm %s1082_s4, %s573_s27 }
  0x4f   : > { %v676_v11 = vld [vmem:[#allocation5 + $0x30] ss:$8 sps:$4 sm:$0xff]   ;;  %v679_v13 = vld [vmem:[#allocation5 + $0x20] ss:$8 sps:$4 sm:$0xff]   ;;  %v680_v14 = vld [vmem:[#allocation5 + $0x14] ss:$8 sps:$4 sm:$0xff]  }
  0x50   : > { %410 = vmatprep.mubr.bf16.mxu0 %v555_v6  ;;  %v682_v15 = vld [vmem:[#allocation5 + $0x10] ss:$8 sps:$4 sm:$0xff]   ;;  %v683_v16 = vld [vmem:[#allocation5 + $0x4] ss:$8 sps:$4 sm:$0xff]   ;;  %v685_v17 = vld [vmem:[#allocation5] ss:$8 sps:$4 sm:$0xff]  }
  0x51   : > { %v553_v19 = vld [vmem:[%s1080_s2] ss:$0 sm:$0xff]  ;;  %v418_v21 = vld [vmem:[#allocation7] sm:$0xff]  ;;  %s265_s10 = scalar_lea.vmem [#allocation8], %s549_s5  ;;  %s422_s18 = scalar_lea.sflag [#allocation4], %s1007_s30 }
  0x52   : > { %s436_s11 = sshll.u32 %s265_s10, 4  ;;  %s859_s22 = smov [#allocation8]   ;;  %s1032_s11 = int_to_ptr.vmem [resolvable:$true] %s436_s11 }
  0x53   : > { %s768_s14 = scalar_lea.vmem %s1032_s11, 128  ;;  %s772_s29 = sshll.u32 %s859_s22, 4  ;;  %s773_s29 = int_to_ptr.vmem [resolvable:$false] %s772_s29 }
  0x54   : > { %p769_p8 = scmp.ne.s32.totalorder %s1032_s11, %s768_s14  ;;  %s774_s6 = scalar_lea.vmem %s773_s29, 256 }
  0x55   : > { %381 = vmatpush1.bf16.xpose.msra.mxu0 %v667_v3  ;;  %p775_p2 = scmp.lt.s32.totalorder %s1032_s11, %s773_s29  ;;  %p776_p13 = scmp.lt.s32.totalorder %s774_s6, %s768_s14 }
  0x56   : > { %382 = vmatprep.subr.bf16.mxu0 %v668_v4  ;;  %p770_p9 = pnand %p769_p8, %p980_p7 }
  0x57   : > { %p777_p0 = por %p776_p13, %p775_p2 }
  0x58   : > { %p771_p11 = pneg %p770_p9 }
  0x5a   : > { %p778_p5 = pnand %p777_p0, %p771_p11 }
  0x5d   : > { %383 = vmatpush1.bf16.xpose.msra.mxu0 %v670_v7 }
  0x5e   : > { %384 = vmatprep.subr.bf16.mxu0 %v671_v8 }
  0x65   : > { %385 = vmatpush1.bf16.xpose.msra.mxu0 %v673_v9 }
  0x66   : > { %386 = vmatprep.subr.bf16.mxu0 %v674_v10 }
  0x6d   : > { %387 = vmatpush1.bf16.xpose.msra.mxu0 %v676_v11 }
  0x6e   : > { %388 = vmatprep.subr.bf16.mxu0 %v677_v12 }
  0x75   : > { %389 = vmatpush1.bf16.xpose.msra.mxu0 %v679_v13 }
  0x76   : > { %390 = vmatprep.subr.bf16.mxu0 %v680_v14 }
  0x7d   : > { %391 = vmatpush1.bf16.xpose.msra.mxu0 %v682_v15 }
  0x7e   : > { %392 = vmatprep.subr.bf16.mxu0 %v683_v16 }
  0x85   : > { %393 = vmatpush1.bf16.xpose.msra.mxu0 %v685_v17 }
  0x8c   : > { %411 = vmatmul.mubr.bf16.vlgmr.msra.gmra.mxu0 %v554_v18 }
 0x14c   : > { %v412_v20 = vpop.f32.mrf.mxu0 }
 0x14d   : > { %v413_v22 = vadd.f32 %v553_v19, %v412_v20 }
 0x14e   : > { %v414_v23 = vpop.f32.mrf.mxu0 }
 0x14f   : > { %v419_v24 = vadd.f32 %v418_v21, %v413_v22 }
 0x150   : > { %v415_v25 = vpop.f32.mrf.mxu0 }
 0x151   : > { %420 = vst [vmem:[%s265_s10] sm:$0xff] %v419_v24 }
 0x152   : > { %v416_v26 = vpop.f32.mrf.mxu0 }
 0x153   : > { %781 = shalt.err (!%p778_p5)
}
 0x154   : > { %s782_s5 = scalar_lea.hbm %s1030_s13, 128  ;;  %s786_s9 = scalar_lea.hbm %s1082_s4, 256 }
 0x155   : > { %p783_p10 = scmp.ne.s32.totalorder %s1030_s13, %s782_s5  ;;  %p787_p6 = scmp.lt.s32.totalorder %s1030_s13, %s1082_s4 }
 0x156   : > { %p788_p12 = scmp.lt.s32.totalorder %s786_s9, %s782_s5 }
 0x157   : > { %p784_p1 = pnand %p783_p10, %p980_p7 }
 0x158   : > { %p789_p3 = por %p788_p12, %p787_p6 }
 0x159   : > { %p785_p4 = pneg %p784_p1 }
 0x15b   : > { %p790_p8 = pnand %p789_p3, %p785_p4 }
 0x15d   : > { %793 = shalt.err (!%p790_p8)
}
 0x15e   : > { %587 = dma.vmem_to_hbm [thread:$0]  (%p980_p7), %s1032_s11, 128, %s1030_s13, %s422_s18  }
 0x15f PF: > { %s448_s27 = sand.u32 1, %s832_s15   ;;  %p1096_p9 = scmp.ne.s32.totalorder %s1089_s26, 0 }
 0x160   : > { %p1097_p11 = scmp.ge.s32.totalorder %s852_s20, 2  ;;  %s449_s10 = scalar_lea.sflag [#allocation4], %s448_s27 }
 0x162   : > { %p601_p2 = pnand %p1097_p11, %p1096_p9 }
 0x164   : > { %p602_p13 = pneg %p601_p2 }
 0x166   : > { %827 = dma.done.wait (%p602_p13), %s449_s10, 128  }
 0x167   : > { %829 = vsyncadd (%p602_p13), %s449_s10, 4294967168  ;;  %s21_s20 = sadd.s32 1, %s852_s20   ;;  %s1098_s15 = smov %s836_s16 }
 0x168   : > { %p18_p0 = scmp.ge.s32.totalorder %s21_s20, 4   ;;  %s1099_s16 = smov %s840_s17 }
 0x169   : > { %s1100_s17 = smov %s989_s7  ;;  %s1101_s18 = smov %s848_s19 }
 0x16a   : > { %s1102_s19 = smov %s1104_s21  ;;  %20 = sbr.rel (!%p18_p0) target bundleno = 7 (0x7), region = 90 }
 0x16f   :  { %454 = vsyncpa [#allocation3], 1 }
 0x170   :  { %456 = vsyncpa [#allocation3 + $0x1], 1 }
 0x171   :  { %457 = vsyncpa [#allocation6], 1 }
 0x172   :  { %458 = vsyncpa [#allocation4], 1 }
 0x173   :  { %460 = vsyncpa [#allocation4 + $0x1], 1 }

</bundles_post_ra>
